<compile_context>
chip_gen: v5e
topology: v5e:2x2
jax: 0.10.0
libtpu: 0.0.40
codegen_flags: <defaults>
</compile_context>

<pallas_src>
import jax
import jax.numpy as jnp
from jax.experimental import pallas as pl
from jax.experimental.pallas import tpu as pltpu


_LANE = 128
_MAX_ROW_TILE = 1024
_VMEM_TILE_BUDGET = 16 * 1024 * 1024   # bytes for double-buffered blocks (safe on v7x 64 MiB VMEM)
_VMEM_LIMIT_BYTES = 48 * 1024 * 1024   # explicit scoped-VMEM limit (< physical on all gens)


# ---------------------------------------------------------------------------
# Kernel
# ---------------------------------------------------------------------------

def _swiglu_kernel(x1_ref, x2_ref, o_ref):
    """x1_ref / x2_ref / o_ref: (tm, tn) VMEM tiles.  out = silu(x1) * x2."""
    x1 = x1_ref[...].astype(jnp.float32)
    gate = (x1 * jax.nn.sigmoid(x1)).astype(x2_ref.dtype)   # silu in f32, mul in input dtype
    o_ref[...] = (gate * x2_ref[...]).astype(o_ref.dtype)


# ---------------------------------------------------------------------------
# Tile selection
# ---------------------------------------------------------------------------

def _sublane_multiple(dtype) -> int:
    itemsize = jnp.dtype(dtype).itemsize
    return max(8, 32 // itemsize)   # f32 -> 8, bf16 -> 16, int8/fp8 -> 32


def _feature_tile(half: int, itemsize: int, sub: int) -> int:
    """Largest lane-aligned feature tile dividing `half` within the VMEM budget."""
    # 2 inputs + 1 output, double-buffered, with at least `sub` rows.
    max_tn = max((_VMEM_TILE_BUDGET // (sub * itemsize * 6)) // _LANE, 1) * _LANE
    if half <= max_tn:
        return half
    n_blk = half // _LANE
    for d in range(min(n_blk, max_tn // _LANE), 0, -1):
        if n_blk % d == 0:
            return d * _LANE
    return _LANE


def _row_tile(m: int, tn: int, itemsize: int, sub: int) -> int:
    per_row_bytes = tn * itemsize * 6          # 2 in + 1 out, double-buffered
    cap = min(max(_VMEM_TILE_BUDGET // per_row_bytes, sub), _MAX_ROW_TILE)
    if m <= cap:
        return m                               # one row-block covering all rows
    return max((cap // sub) * sub, sub)        # ragged last block handled by pl.cdiv grid


# ---------------------------------------------------------------------------
# Wrapper
# ---------------------------------------------------------------------------

def swiglu(x: jax.Array) -> jax.Array:
    """SwiGLU over the last axis. x: [..., H] with H even -> [..., H//2]."""
    orig_shape = x.shape
    h = orig_shape[-1]
    assert h % 2 == 0, "last dim must be even for SwiGLU chunk"
    half = h // 2

    m = 1
    for d in orig_shape[:-1]:
        m *= d
    x2d = x.reshape(m, h)

    itemsize = jnp.dtype(x.dtype).itemsize
    sub = _sublane_multiple(x.dtype)

    if half % _LANE == 0:
        # Fast path: lane-aligned split of the feature axis at the BlockSpec level.
        tn = _feature_tile(half, itemsize, sub)
        tm = _row_tile(m, tn, itemsize, sub)
        n_fblocks = half // tn
        grid = (pl.cdiv(m, tm), n_fblocks)

        def first_half_map(i, j):
            return (i, j)

        def second_half_map(i, j):
            return (i, j + n_fblocks)

        out2d = pl.pallas_call(
            _swiglu_kernel,
            out_shape=jax.ShapeDtypeStruct((m, half), x.dtype),
            grid_spec=pltpu.PrefetchScalarGridSpec(
                num_scalar_prefetch=0,
                grid=grid,
                in_specs=[
                    pl.BlockSpec((tm, tn), first_half_map),    # first half of feature axis
                    pl.BlockSpec((tm, tn), second_half_map),   # second half (same array)
                ],
                out_specs=pl.BlockSpec((tm, tn), first_half_map),
            ),
            compiler_params=pltpu.CompilerParams(
                dimension_semantics=("parallel", "parallel"),
                vmem_limit_bytes=_VMEM_LIMIT_BYTES,
            ),
        )(x2d, x2d)
    else:
        # Fallback (H//2 not a multiple of 128): split in the wrapper so every
        # Pallas block is full-extent on the feature axis (always layout-legal).
        x1 = x2d[:, :half]
        x2 = x2d[:, half:]
        tm = _row_tile(m, half, itemsize, sub)
        out2d = pl.pallas_call(
            _swiglu_kernel,
            out_shape=jax.ShapeDtypeStruct((m, half), x.dtype),
            grid_spec=pltpu.PrefetchScalarGridSpec(
                num_scalar_prefetch=0,
                grid=(pl.cdiv(m, tm),),
                in_specs=[
                    pl.BlockSpec((tm, half), lambda i: (i, 0)),
                    pl.BlockSpec((tm, half), lambda i: (i, 0)),
                ],
                out_specs=pl.BlockSpec((tm, half), lambda i: (i, 0)),
            ),
            compiler_params=pltpu.CompilerParams(
                dimension_semantics=("parallel",),
                vmem_limit_bytes=_VMEM_LIMIT_BYTES,
            ),
        )(x1, x2)

    return out2d.reshape(*orig_shape[:-1], half)


def _swiglu_ref(x):
    x1, x2 = jnp.split(x, 2, axis=-1)
    return jax.nn.silu(x1) * x2


if __name__ == "__main__":
    # 1) Main test: batch=2, seq=8, hidden=256 (f32) -> lane-aligned split path.
    key = jax.random.PRNGKey(0)
    x = jax.random.normal(key, (2, 8, 256), dtype=jnp.float32)
    out = swiglu(x)
    jax.block_until_ready(out)
    ref = _swiglu_ref(x)
    assert out.shape == (2, 8, 128), out.shape
    assert jnp.allclose(out, ref, atol=1e-5, rtol=1e-5), "f32 mismatch vs reference"

    # 2) bf16 input with non-power-of-two leading dims (same split path).
    xb = jax.random.normal(jax.random.PRNGKey(0), (3, 7, 512), dtype=jnp.bfloat16)
    outb = swiglu(xb)
    jax.block_until_ready(outb)
    refb = _swiglu_ref(xb.astype(jnp.float32))
    assert outb.shape == (3, 7, 256), outb.shape
    assert jnp.allclose(outb.astype(jnp.float32), refb, atol=2e-2, rtol=2e-2), \
        "bf16 mismatch vs reference"

    # 3) Fallback path: H//2 not a multiple of 128 (hidden=120 -> half=60).
    xc = jax.random.normal(jax.random.PRNGKey(0), (2, 5, 120), dtype=jnp.float32)
    outc = swiglu(xc)
    jax.block_until_ready(outc)
    refc = _swiglu_ref(xc)
    assert outc.shape == (2, 5, 60), outc.shape
    assert jnp.allclose(outc, refc, atol=1e-5, rtol=1e-5), "fallback mismatch vs reference"

    print("KERNEL_OK")
</pallas_src>

<mosaic_0001>
module attributes {stable_mosaic.version = 11 : i64} {
  func.func @_swiglu_kernel(%arg0: i32, %arg1: i32, %arg2: memref<16x128xf32, #tpu.memory_space<vmem>>, %arg3: memref<16x128xf32, #tpu.memory_space<vmem>>, %arg4: memref<16x128xf32, #tpu.memory_space<vmem>>) attributes {dimension_semantics = [#tpu.dimension_semantics<parallel>, #tpu.dimension_semantics<parallel>], iteration_bounds = array<i64: 1, 1>, scalar_prefetch = 0 : i64, scratch_operands = 0 : i64, tpu.core_type = #tpu.core_type<tc>, window_params = [{transform_indices = @transform_0, window_bounds = array<i64: 16, 128>}, {transform_indices = @transform_1, window_bounds = array<i64: 16, 128>}, {transform_indices = @transform_2, window_bounds = array<i64: 16, 128>}]} {
    %c0 = arith.constant 0 : index
    %c0_0 = arith.constant 0 : index
    %0 = vector.load %arg2[%c0, %c0_0] : memref<16x128xf32, #tpu.memory_space<vmem>>, vector<16x128xf32>
    %1 = arith.negf %0 : vector<16x128xf32>
    %2 = math.exp %1 : vector<16x128xf32>
    %cst = arith.constant 1.000000e+00 : f32
    %3 = vector.broadcast %cst : f32 to vector<16x128xf32>
    %4 = arith.addf %3, %2 : vector<16x128xf32>
    %5 = arith.divf %3, %4 : vector<16x128xf32>
    %6 = arith.mulf %0, %5 : vector<16x128xf32>
    %c0_1 = arith.constant 0 : index
    %c0_2 = arith.constant 0 : index
    %7 = vector.load %arg3[%c0_1, %c0_2] : memref<16x128xf32, #tpu.memory_space<vmem>>, vector<16x128xf32>
    %8 = arith.mulf %6, %7 : vector<16x128xf32>
    %c0_3 = arith.constant 0 : index
    %c0_4 = arith.constant 0 : index
    %9 = vector.load %arg4[%c0_3, %c0_4] : memref<16x128xf32, #tpu.memory_space<vmem>>, vector<16x128xf32>
    tpu.vector_store %arg4[%c0_3, %c0_4], %8 {strides = array<i32>} : memref<16x128xf32, #tpu.memory_space<vmem>>, vector<16x128xf32>,
    return
  }
  func.func @transform_0(%arg0: i32, %arg1: i32) -> (i32, i32) {
    %c0_i32 = arith.constant 0 : i32
    return %arg0, %arg1 : i32, i32
  }
  func.func @transform_1(%arg0: i32, %arg1: i32) -> (i32, i32) {
    %c1_i32 = arith.constant 1 : i32
    %0 = arith.addi %arg1, %c1_i32 : i32
    %c0_i32 = arith.constant 0 : i32
    return %arg0, %0 : i32, i32
  }
  func.func @transform_2(%arg0: i32, %arg1: i32) -> (i32, i32) {
    %c0_i32 = arith.constant 0 : i32
    return %arg0, %arg1 : i32, i32
  }
}

</mosaic_0001>

<bundles_post_ra>
// kernel: tpu_custom_call.1
= control target key start
LH: loop header
LB: loop body
LE: loop exit
PB: predicated region body
PF: predicated region fallthrough
CT: control target
= control target key end

     0   :  { %7 = vsyncpa [#allocation3], 0  ;;  %s248_s0 = inlined_call_operand.hbm [shape: f32[16,256], index: 0, kind: input, shape index: {}]   ;;  %s249_s1 = inlined_call_operand.hbm [shape: f32[16,256], index: 1, kind: input, shape index: {}]   ;;  %s250_s2 = inlined_call_operand.hbm [shape: f32[16,128], index: 2, kind: output, shape index: {}]  }
   0x1   :  { %8 = vsyncpa [#allocation6], 0 }
   0x2   :  { %9 = vsyncpa [#allocation4], 0  ;;  %s14_s11 = sshll.u32 %s248_s0, 4  ;;  %s211_s12 = smov [#allocation2]   ;;  %s15_s11 = int_to_ptr.hbm [resolvable:$true] %s14_s11 }
   0x3   :  { %s16_s13 = sshll.u32 %s211_s12, 4  ;;  %s212_s14 = smov 256   ;;  %s17_s13 = int_to_ptr.vmem [resolvable:$true] %s16_s13 }
   0x4   :  { %s213_s15 = smov 128   ;;  %s214_s16 = smov 8  }
   0x5   :  { %22 = dma.hbm_to_vmem [thread:$0]  %s15_s11, 256, %s17_s13, [#allocation3], %s212_s14, %s213_s15, %s214_s16  }
   0x6   :  { %s116_s19 = scalar_lea.hbm %s249_s1, 8  ;;  %s215_s21 = smov [#allocation5]  }
   0x7   :  { %s30_s20 = sshll.u32 %s116_s19, 4  ;;  %s32_s22 = sshll.u32 %s215_s21, 4  ;;  %s31_s20 = int_to_ptr.hbm [resolvable:$true] %s30_s20  ;;  %s33_s22 = int_to_ptr.vmem [resolvable:$true] %s32_s22 }
   0x8   :  { %38 = dma.hbm_to_vmem [thread:$0]  %s31_s20, 256, %s33_s22, [#allocation6], %s212_s14, %s213_s15, %s214_s16  }
   0x9   :  { %205 = dma.done.wait [#allocation3], 256  }
   0xa   :  { %206 = vsyncadd [#allocation3], 4294967040 }
   0xb   :  { %207 = dma.done.wait [#allocation6], 256  }
   0xc   :  { %208 = vsyncadd [#allocation6], 4294967040  ;;  %v48_v0 = vld [vmem:[#allocation2] sm:$0xff]  ;;  %v49_v1 = vld [vmem:[#allocation2 + $0x8] sm:$0xff]  ;;  %s216_s0 = smov [#allocation7]   ;;  %s102_s25 = sshll.u32 %s250_s2, 4  ;;  %s103_s25 = int_to_ptr.hbm [resolvable:$true] %s102_s25 }
   0xd   :  { %v117_v2 = vmul.f32 -1.442695, %v48_v0  ;;  %v118_v3 = vmul.f32 -1.442695, %v49_v1  ;;  %v90_v26 = vld [vmem:[#allocation5] sm:$0xff]  ;;  %v91_v30 = vld [vmem:[#allocation5 + $0x8] sm:$0xff] }
   0xe   :  { %s100_s1 = sshll.u32 %s216_s0, 4  ;;  %s101_s1 = int_to_ptr.vmem [resolvable:$true] %s100_s1 }
   0xf   :  { %125 = vpow2.f32 %v117_v2 }
  0x10   :  { %127 = vpow2.f32 %v118_v3 }
  0x15   :  { %v126_v4 = vpop.eup %125 }
  0x16   :  { %v128_v5 = vpop.eup %127  ;;  %v56_v6 = vadd.f32 1.0, %v126_v4 }
  0x17   :  { %v57_v7 = vadd.f32 1.0, %v128_v5 }
  0x18   :  { %129 = vrcp.f32 %v56_v6  ;;  %vm63_vm0 = vweird.f32 %v56_v6  ;;  %v69_v11 = vand.u32 2147483648, %v56_v6  ;;  %v67_v14 = vand.u32 2147483647, %v56_v6 }
  0x19   :  { %131 = vrcp.f32 %v57_v7  ;;  %v84_v15 = vand.u32 2147483648, %v57_v7  ;;  %vm78_vm2 = vweird.f32 %v57_v7  ;;  %v82_v17 = vand.u32 2147483647, %v57_v7 }
  0x1a   :  { %v70_v19 = vor.u32 1.1754944e-38, %v69_v11  ;;  %vm68_vm5 = vcmp.eq.f32.partialorder %v67_v14, 8.507059e+37 }
  0x1b   :  { %v85_v22 = vor.u32 1.1754944e-38, %v84_v15  ;;  %vm83_vm7 = vcmp.eq.f32.partialorder %v82_v17, 8.507059e+37 }
  0x1e   :  { %v130_v8 = vpop.eup %129 }
  0x1f   :  { %v132_v9 = vpop.eup %131  ;;  %v59_v10 = vmul.f32 %v130_v8, %v56_v6  ;;  %vm64_vm1 = vweird.f32 %v130_v8 }
  0x20   :  { %v74_v12 = vmul.f32 %v132_v9, %v57_v7  ;;  %vm79_vm3 = vweird.f32 %v132_v9  ;;  %vm65_vm4 = vmor %vm63_vm0, %vm64_vm1 }
  0x21   :  { %v60_v13 = vsub.f32 1.0, %v59_v10  ;;  %vm80_vm6 = vmor %vm78_vm2, %vm79_vm3 }
  0x22   :  { %v75_v16 = vsub.f32 1.0, %v74_v12 }
  0x23   :  { %v61_v18 = vmul.f32 %v130_v8, %v60_v13 }
  0x24   :  { %v76_v20 = vmul.f32 %v132_v9, %v75_v16 }
  0x25   :  { %v62_v21 = vadd.f32 %v130_v8, %v61_v18 }
  0x26   :  { %v77_v23 = vadd.f32 %v132_v9, %v76_v20 }
  0x27   :  { %v66_v24 = vsel %vm65_vm4, %v130_v8, %v62_v21 }
  0x28   :  { %v71_v25 = vsel %vm68_vm5, %v70_v19, %v66_v24  ;;  %v81_v27 = vsel %vm80_vm6, %v132_v9, %v77_v23 }
  0x29   :  { %v88_v28 = vmul.f32 %v71_v25, %v48_v0  ;;  %v86_v29 = vsel %vm83_vm7, %v85_v22, %v81_v27 }
  0x2a   :  { %v89_v31 = vmul.f32 %v86_v29, %v49_v1 }
  0x2b   :  { %v92_v32 = vmul.f32 %v90_v26, %v88_v28 }
  0x2c   :  { %v93_v33 = vmul.f32 %v91_v30, %v89_v31 }
  0x2d   :  { %94 = vst [vmem:[#allocation7] sm:$0xff] %v92_v32 }
  0x2e   :  { %95 = vst [vmem:[#allocation7 + $0x8] sm:$0xff] %v93_v33 }
  0x2f   :  { %108 = dma.vmem_to_hbm [thread:$0]  %s101_s1, 256, %s103_s25, [#allocation4], %s213_s15, %s213_s15, %s214_s16  }
  0x30   :  { %209 = dma.done.wait [#allocation4], 256  }
  0x31   :  { %210 = vsyncadd [#allocation4], 4294967040 }
  0x32   :  { %113 = vsyncpa [#allocation3], 1 }
  0x33   :  { %114 = vsyncpa [#allocation6], 1 }
  0x34   :  { %115 = vsyncpa [#allocation4], 1 }

</bundles_post_ra>
